<compile_context>
chip_gen: v6e
topology: v6e:2x2x1
jax: 0.10.0
libtpu: 0.0.40
codegen_flags: <defaults>
</compile_context>

<pallas_src>
import functools

import jax
import jax.numpy as jnp
from jax import lax
from jax.experimental import pallas as pl
from jax.experimental.pallas import tpu as pltpu

LANES = 128  # last (lane) dim of the flattened slab


def _chip_config():
    """(max_tile_rows, n_split, vmem_limit_bytes) per TPU generation."""
    try:
        kind = jax.devices()[0].device_kind.lower()
    except Exception:  # pragma: no cover - non-TPU / odd backends
        kind = ""
    if "v7" in kind:
        # 8192 rows f32 = 4 MiB/block; 3 inputs x 2 buffers = 24 MiB (< 64 MiB phys).
        return 8192, 2, 40 * 1024 * 1024
    if "v6" in kind:
        return 8192, 1, 48 * 1024 * 1024
    # v5e / default: firmly HBM-bound, 2048 rows already amortizes step overhead.
    return 2048, 1, 32 * 1024 * 1024


def _loss_kernel(img1_ref, img2_ref, mask_ref, sum_ref, cnt_ref, *,
                 norm, steps_per_split, total_steps, rem_rows,
                 mask_is_bool, guard_oob, has_tail):
    s = pl.program_id(0)   # split ("parallel": one per TensorCore on v7x)
    j = pl.program_id(1)   # step within split (reduction axis, "arbitrary")

    @pl.when(j == 0)
    def _():
        sum_ref[...] = jnp.zeros_like(sum_ref)
        cnt_ref[...] = jnp.zeros_like(cnt_ref)

    b = s * steps_per_split + j

    def load_mask():
        m = mask_ref[...]
        if not mask_is_bool:
            m = m > 0
        return m

    def accumulate(m):
        d = img1_ref[...].astype(jnp.float32) - img2_ref[...].astype(jnp.float32)
        if norm == "L2":
            val = d * d
        else:  # "L1"
            val = jnp.abs(d)
        val = jnp.where(m, val, jnp.float32(0.0))
        cnt = m.astype(jnp.float32)
        tr = val.shape[0]
        # Reduce the (tile_rows, 128) block down to the (8, 128) native tile:
        # same VALU add count, but only a single tiny RMW on the resident
        # output accumulators (vector-store slot is the tightest VLIW slot).
        sum_ref[...] += val.reshape(tr // 8, 8, LANES).sum(axis=0)
        cnt_ref[...] += cnt.reshape(tr // 8, 8, LANES).sum(axis=0)

    in_range = (b < total_steps) if guard_oob else None
    is_tail = (b == total_steps - 1) if has_tail else None

    if has_tail:
        # Main (full) blocks: no iota work at all.
        cond_main = jnp.logical_not(is_tail)
        if guard_oob:
            cond_main = jnp.logical_and(in_range, cond_main)

        @pl.when(cond_main)
        def _():
            accumulate(load_mask())

        # Final partial block only: mask the rows that lie beyond the slab
        # (their contents are unspecified).  Sub-row padding inside the slab
        # is already zero in the mask, so a row-level mask is sufficient.
        cond_tail = is_tail
        if guard_oob:
            cond_tail = jnp.logical_and(in_range, cond_tail)

        @pl.when(cond_tail)
        def _():
            row = lax.broadcasted_iota(jnp.int32, mask_ref.shape, 0)
            accumulate(jnp.logical_and(load_mask(), row < rem_rows))
    else:
        if guard_oob:
            # Clamped duplicate block (split padding): skip it entirely.
            @pl.when(in_range)
            def _():
                accumulate(load_mask())
        else:
            accumulate(load_mask())


def _to_slab(x, rows):
    flat = jnp.reshape(x, (-1,))
    padded = rows * LANES
    if flat.shape[0] != padded:
        # NOTE: correctness of the tail depends on this padding with ZEROS
        # (jnp.pad default), so padded mask elements never count.
        flat = jnp.pad(flat, (0, padded - flat.shape[0]))
    return jnp.reshape(flat, (rows, LANES))


def masked_loss(img1, img2, mask, wts=None, *, norm="L2",
                max_tile_rows=None, n_split=None):
    """Pallas equivalent of Loss(norm)(img1, img2, mask, wts=None)."""
    if norm not in ("L1", "L2"):
        raise NotImplementedError(f"Expected L1, L2 but got {norm}")
    if wts is not None:
        # TODO(synk): per-element `wts` multiplies a data-dependent (masked,
        # flattened) selection in the PyTorch version; only wts=None supported.
        raise NotImplementedError("wts is not supported in the Pallas kernel")

    n_elem = 1
    for d in img1.shape:
        n_elem *= d
    if n_elem == 0:
        # torch.mean over an empty selection -> NaN.
        return jnp.float32(jnp.nan)

    cfg_tile, cfg_split, vmem_limit = _chip_config()
    if max_tile_rows is None:
        max_tile_rows = cfg_tile
    if n_split is None:
        n_split = cfg_split

    # Rows padded to a multiple of 32 so blocks satisfy sublane tiling for any
    # input dtype (f32/bf16/int8); padding is a small full-copy only when the
    # element count is not already a multiple of 32*128.
    rows = pl.cdiv(n_elem, 32 * LANES) * 32
    tile_rows = min(max_tile_rows, rows)
    tile_rows = max(8, (tile_rows // 8) * 8)

    total_steps = pl.cdiv(rows, tile_rows)
    if total_steps < 2:
        n_split = 1
    steps_per_split = pl.cdiv(total_steps, n_split)
    guard_oob = (n_split * steps_per_split) != total_steps

    rem_rows = rows - (total_steps - 1) * tile_rows
    has_tail = rem_rows != tile_rows  # final block extends past the slab rows

    i1 = _to_slab(img1, rows)
    i2 = _to_slab(img2, rows)
    mk = _to_slab(mask, rows)

    def in_map(s, j):
        b = s * steps_per_split + j
        if guard_oob:
            # Out-of-range duplicate re-reads the last valid block; its
            # contribution is skipped in-kernel by the scalar guard.
            b = jnp.minimum(b, total_steps - 1)
        return (b, 0)

    in_spec = pl.BlockSpec((tile_rows, LANES), in_map)
    out_spec = pl.BlockSpec((8, LANES), lambda s, j: (s, 0))

    kernel = functools.partial(
        _loss_kernel,
        norm=norm,
        steps_per_split=steps_per_split,
        total_steps=total_steps,
        rem_rows=rem_rows,
        mask_is_bool=(mask.dtype == jnp.bool_),
        guard_oob=guard_oob,
        has_tail=has_tail,
    )

    sums, cnts = pl.pallas_call(
        kernel,
        out_shape=(
            jax.ShapeDtypeStruct((n_split * 8, LANES), jnp.float32),
            jax.ShapeDtypeStruct((n_split * 8, LANES), jnp.float32),
        ),
        grid_spec=pltpu.PrefetchScalarGridSpec(
            num_scalar_prefetch=0,
            grid=(n_split, steps_per_split),
            in_specs=[in_spec, in_spec, in_spec],
            out_specs=[out_spec, out_spec],
        ),
        compiler_params=pltpu.CompilerParams(
            dimension_semantics=("parallel", "arbitrary"),
            vmem_limit_bytes=vmem_limit,
        ),
    )(i1, i2, mk)

    # Tiny epilogue: reduce the (n_split*8, 128) partials and divide
    # (0/0 -> NaN, matching torch.mean over an empty selection).
    return jnp.sum(sums) / jnp.sum(cnts)


def _reference(img1, img2, mask, norm):
    m = mask > 0
    d = img1.astype(jnp.float32) - img2.astype(jnp.float32)
    val = d * d if norm == "L2" else jnp.abs(d)
    val = jnp.where(m, val, 0.0)
    return jnp.sum(val) / jnp.sum(m.astype(jnp.float32))


if __name__ == "__main__":
    key = jax.random.PRNGKey(0)
    ok = True

    # NCHW inputs consistent with the PyTorch module's typical usage.
    # The override cases force the multi-block / partial-tail / split-guard
    # code paths at small sizes (they would otherwise need huge inputs).
    cases = [
        dict(shape=(2, 4, 16, 16), dtype=jnp.float32, bool_mask=False, kw={}),
        dict(shape=(2, 3, 15, 17), dtype=jnp.float32, bool_mask=False, kw={}),
        dict(shape=(2, 4, 40, 33), dtype=jnp.float32, bool_mask=True,
             kw=dict(max_tile_rows=64)),                 # multi-block + tail row mask
        dict(shape=(2, 4, 40, 33), dtype=jnp.float32, bool_mask=False,
             kw=dict(max_tile_rows=32, n_split=2)),      # 2-way split + OOB guard
        dict(shape=(2, 4, 16, 16), dtype=jnp.bfloat16, bool_mask=False, kw={}),
    ]

    for case in cases:
        k1, k2, k3, key = jax.random.split(key, 4)
        img1 = jax.random.normal(k1, case["shape"], dtype=jnp.float32).astype(case["dtype"])
        img2 = jax.random.normal(k2, case["shape"], dtype=jnp.float32).astype(case["dtype"])
        m_bool = jax.random.uniform(k3, case["shape"]) > 0.5
        mask = m_bool if case["bool_mask"] else m_bool.astype(jnp.float32)

        for norm in ("L2", "L1"):
            loss = masked_loss(img1, img2, mask, norm=norm, **case["kw"])
            jax.block_until_ready(loss)
            ref = _reference(img1, img2, mask, norm)
            if not jnp.allclose(loss, ref, rtol=1e-4, atol=1e-5):
                ok = False
                print("MISMATCH", case["shape"], str(case["dtype"]), norm,
                      float(loss), float(ref))

    if ok:
        print("KERNEL_OK")
</pallas_src>

<mosaic_0001>
module attributes {stable_mosaic.version = 11 : i64} {
  func.func @_loss_kernel(%arg0: i32, %arg1: i32, %arg2: memref<32x128xf32, #tpu.memory_space<vmem>>, %arg3: memref<32x128xf32, #tpu.memory_space<vmem>>, %arg4: memref<32x128xf32, #tpu.memory_space<vmem>>, %arg5: memref<8x128xf32, #tpu.memory_space<vmem>>, %arg6: memref<8x128xf32, #tpu.memory_space<vmem>>) attributes {dimension_semantics = [#tpu.dimension_semantics<parallel>, #tpu.dimension_semantics<arbitrary>], iteration_bounds = array<i64: 1, 1>, scalar_prefetch = 0 : i64, scratch_operands = 0 : i64, tpu.core_type = #tpu.core_type<tc>, window_params = [{transform_indices = @transform_0, window_bounds = array<i64: 32, 128>}, {transform_indices = @transform_1, window_bounds = array<i64: 32, 128>}, {transform_indices = @transform_2, window_bounds = array<i64: 32, 128>}, {transform_indices = @transform_3, window_bounds = array<i64: 8, 128>}, {transform_indices = @transform_4, window_bounds = array<i64: 8, 128>}]} {
    %c0_i32 = arith.constant 0 : i32
    %0 = arith.cmpi eq, %arg1, %c0_i32 : i32
    %1 = arith.extui %0 : i1 to i32
    %c0_i32_0 = arith.constant 0 : i32
    %2 = arith.cmpi ne, %1, %c0_i32_0 : i32
    scf.if %2 {
      %cst_17 = arith.constant 0.000000e+00 : f32
      %24 = vector.broadcast %cst_17 : f32 to vector<8x128xf32>
      %c0_18 = arith.constant 0 : index
      %c0_19 = arith.constant 0 : index
      %25 = vector.load %arg5[%c0_18, %c0_19] : memref<8x128xf32, #tpu.memory_space<vmem>>, vector<8x128xf32>
      tpu.vector_store %arg5[%c0_18, %c0_19], %24 {strides = array<i32>} : memref<8x128xf32, #tpu.memory_space<vmem>>, vector<8x128xf32>,
      %cst_20 = arith.constant 0.000000e+00 : f32
      %26 = vector.broadcast %cst_20 : f32 to vector<8x128xf32>
      %c0_21 = arith.constant 0 : index
      %c0_22 = arith.constant 0 : index
      %27 = vector.load %arg6[%c0_21, %c0_22] : memref<8x128xf32, #tpu.memory_space<vmem>>, vector<8x128xf32>
      tpu.vector_store %arg6[%c0_21, %c0_22], %26 {strides = array<i32>} : memref<8x128xf32, #tpu.memory_space<vmem>>, vector<8x128xf32>,
    } else {
    }
    %c0 = arith.constant 0 : index
    %c0_1 = arith.constant 0 : index
    %3 = vector.load %arg4[%c0, %c0_1] : memref<32x128xf32, #tpu.memory_space<vmem>>, vector<32x128xf32>
    %cst = arith.constant 0.000000e+00 : f32
    %4 = vector.broadcast %cst : f32 to vector<32x128xf32>
    %5 = arith.cmpf ogt, %3, %4 : vector<32x128xf32>
    %c0_2 = arith.constant 0 : index
    %c0_3 = arith.constant 0 : index
    %6 = vector.load %arg2[%c0_2, %c0_3] : memref<32x128xf32, #tpu.memory_space<vmem>>, vector<32x128xf32>
    %c0_4 = arith.constant 0 : index
    %c0_5 = arith.constant 0 : index
    %7 = vector.load %arg3[%c0_4, %c0_5] : memref<32x128xf32, #tpu.memory_space<vmem>>, vector<32x128xf32>
    %8 = arith.subf %6, %7 : vector<32x128xf32>
    %9 = arith.mulf %8, %8 : vector<32x128xf32>
    %cst_6 = arith.constant 0.000000e+00 : f32
    %10 = vector.broadcast %cst_6 : f32 to vector<32x128xf32>
    %11 = arith.select %5, %9, %10 : vector<32x128xi1>, vector<32x128xf32>
    %12 = arith.extui %5 : vector<32x128xi1> to vector<32x128xi32>
    %13 = arith.sitofp %12 : vector<32x128xi32> to vector<32x128xf32>
    %c0_7 = arith.constant 0 : index
    %c0_8 = arith.constant 0 : index
    %14 = vector.load %arg5[%c0_7, %c0_8] : memref<8x128xf32, #tpu.memory_space<vmem>>, vector<8x128xf32>
    %15 = vector.shape_cast %11 : vector<32x128xf32> to vector<4x8x128xf32>
    %cst_9 = arith.constant dense<0.000000e+00> : vector<8x128xf32>
    %16 = vector.multi_reduction <add>, %15, %cst_9 [0] : vector<4x8x128xf32> to vector<8x128xf32>
    %17 = arith.addf %14, %16 : vector<8x128xf32>
    %c0_10 = arith.constant 0 : index
    %c0_11 = arith.constant 0 : index
    %18 = vector.load %arg5[%c0_10, %c0_11] : memref<8x128xf32, #tpu.memory_space<vmem>>, vector<8x128xf32>
    tpu.vector_store %arg5[%c0_10, %c0_11], %17 {strides = array<i32>} : memref<8x128xf32, #tpu.memory_space<vmem>>, vector<8x128xf32>,
    %c0_12 = arith.constant 0 : index
    %c0_13 = arith.constant 0 : index
    %19 = vector.load %arg6[%c0_12, %c0_13] : memref<8x128xf32, #tpu.memory_space<vmem>>, vector<8x128xf32>
    %20 = vector.shape_cast %13 : vector<32x128xf32> to vector<4x8x128xf32>
    %cst_14 = arith.constant dense<0.000000e+00> : vector<8x128xf32>
    %21 = vector.multi_reduction <add>, %20, %cst_14 [0] : vector<4x8x128xf32> to vector<8x128xf32>
    %22 = arith.addf %19, %21 : vector<8x128xf32>
    %c0_15 = arith.constant 0 : index
    %c0_16 = arith.constant 0 : index
    %23 = vector.load %arg6[%c0_15, %c0_16] : memref<8x128xf32, #tpu.memory_space<vmem>>, vector<8x128xf32>
    tpu.vector_store %arg6[%c0_15, %c0_16], %22 {strides = array<i32>} : memref<8x128xf32, #tpu.memory_space<vmem>>, vector<8x128xf32>,
    return
  }
  func.func @transform_0(%arg0: i32, %arg1: i32) -> (i32, i32) {
    %c1_i32 = arith.constant 1 : i32
    %0 = arith.muli %arg0, %c1_i32 : i32
    %1 = arith.addi %0, %arg1 : i32
    %c0_i32 = arith.constant 0 : i32
    %c0_i32_0 = arith.constant 0 : i32
    return %1, %c0_i32 : i32, i32
  }
  func.func @transform_1(%arg0: i32, %arg1: i32) -> (i32, i32) {
    %c1_i32 = arith.constant 1 : i32
    %0 = arith.muli %arg0, %c1_i32 : i32
    %1 = arith.addi %0, %arg1 : i32
    %c0_i32 = arith.constant 0 : i32
    %c0_i32_0 = arith.constant 0 : i32
    return %1, %c0_i32 : i32, i32
  }
  func.func @transform_2(%arg0: i32, %arg1: i32) -> (i32, i32) {
    %c1_i32 = arith.constant 1 : i32
    %0 = arith.muli %arg0, %c1_i32 : i32
    %1 = arith.addi %0, %arg1 : i32
    %c0_i32 = arith.constant 0 : i32
    %c0_i32_0 = arith.constant 0 : i32
    return %1, %c0_i32 : i32, i32
  }
  func.func @transform_3(%arg0: i32, %arg1: i32) -> (i32, i32) {
    %c0_i32 = arith.constant 0 : i32
    %c0_i32_0 = arith.constant 0 : i32
    return %arg0, %c0_i32 : i32, i32
  }
  func.func @transform_4(%arg0: i32, %arg1: i32) -> (i32, i32) {
    %c0_i32 = arith.constant 0 : i32
    %c0_i32_0 = arith.constant 0 : i32
    return %arg0, %c0_i32 : i32, i32
  }
}

</mosaic_0001>

<bundles_post_ra>
// kernel: tpu_custom_call.1
= control target key start
LH: loop header
LB: loop body
LE: loop exit
PB: predicated region body
PF: predicated region fallthrough
CT: control target
= control target key end

     0   :  { %10 = vsyncpa [#allocation3], 0  ;;  %s337_s0 = inlined_call_operand.hbm [shape: f32[32,128], index: 0, kind: input, shape index: {}]   ;;  %s338_s1 = inlined_call_operand.hbm [shape: f32[32,128], index: 1, kind: input, shape index: {}]   ;;  %s339_s2 = inlined_call_operand.hbm [shape: f32[32,128], index: 2, kind: input, shape index: {}]   ;;  %s340_s3 = inlined_call_operand.hbm [shape: f32[8,128], index: 3, kind: output, shape index: {0}]   ;;  %s341_s4 = inlined_call_operand.hbm [shape: f32[8,128], index: 4, kind: output, shape index: {1}]  }
   0x1   :  { %11 = vsyncpa [#allocation6], 0 }
   0x2   :  { %12 = vsyncpa [#allocation4], 0 }
   0x3   :  { %13 = vsyncpa [#allocation10], 0  ;;  %s281_s15 = smov [#allocation5]   ;;  %s282_s17 = smov [#allocation2]  }
   0x4   :  { %s39_s16 = sshll.u32 %s281_s15, 4  ;;  %s23_s18 = sshll.u32 %s282_s17, 4  ;;  %s40_s16 = int_to_ptr.vmem [resolvable:$true] %s39_s16  ;;  %s24_s18 = int_to_ptr.vmem [resolvable:$true] %s23_s18 }
   0x5   :  { %s181_s19 = scalar_lea.vmem %s40_s16, 512  ;;  %p186_p1 = scmp.lt.s32.totalorder %s40_s16, %s40_s16 }
   0x6   :  { %p182_p0 = scmp.ne.s32.totalorder %s40_s16, %s181_s19  ;;  %p187_p2 = scmp.lt.s32.totalorder %s181_s19, %s181_s19 }
   0x8   :  { %p188_p3 = por %p187_p2, %p186_p1 }
   0xa   :  { %p189_p4 = pnand %p188_p3, %p182_p0 }
   0xc   :  { %192 = shalt.err (!%p189_p4)
}
   0xd   :  { %s283_s20 = smov 128   ;;  %s284_s21 = smov 8  }
   0xe   :  { %45 = dma.hbm_to_vmem [thread:$0]  %s338_s1, 512, %s40_s16, [#allocation6], %s283_s20, %s283_s20, %s284_s21  }
   0xf   :  { %s201_s24 = scalar_lea.vmem %s24_s18, 512  ;;  %p206_p6 = scmp.lt.s32.totalorder %s24_s18, %s24_s18 }
  0x10   :  { %p202_p5 = scmp.ne.s32.totalorder %s24_s18, %s201_s24  ;;  %p207_p7 = scmp.lt.s32.totalorder %s201_s24, %s201_s24 }
  0x12   :  { %p208_p8 = por %p207_p7, %p206_p6 }
  0x14   :  { %p209_p9 = pnand %p208_p8, %p202_p5 }
  0x16   :  { %212 = shalt.err (!%p209_p9)
}
  0x17   :  { %29 = dma.hbm_to_vmem [thread:$0]  %s337_s0, 512, %s24_s18, [#allocation3], %s283_s20, %s283_s20, %s284_s21  }
  0x18   :  { %s285_s27 = smov [#allocation7]  }
  0x19   :  { %s55_s28 = sshll.u32 %s285_s27, 4  ;;  %s56_s28 = int_to_ptr.vmem [resolvable:$true] %s55_s28 }
  0x1a   :  { %s221_s29 = scalar_lea.vmem %s56_s28, 512  ;;  %p226_p11 = scmp.lt.s32.totalorder %s56_s28, %s56_s28 }
  0x1b   :  { %p222_p10 = scmp.ne.s32.totalorder %s56_s28, %s221_s29  ;;  %p227_p12 = scmp.lt.s32.totalorder %s221_s29, %s221_s29 }
  0x1d   :  { %p228_p13 = por %p227_p12, %p226_p11 }
  0x1f   :  { %p229_p0 = pnand %p228_p13, %p222_p10 }
  0x21   :  { %232 = shalt.err (!%p229_p0)
}
  0x22   :  { %61 = dma.hbm_to_vmem [thread:$0]  %s339_s2, 512, %s56_s28, [#allocation6], %s283_s20, %s283_s20, %s284_s21  }
  0x23   :  { %273 = dma.done.wait [#allocation3], 512  }
  0x24   :  { %274 = vsyncadd [#allocation3], 4294966784 }
  0x25   :  { %275 = dma.done.wait [#allocation6], 1024  }
  0x26   :  { %276 = vsyncadd [#allocation6], 4294966272  ;;  %v83_v0 = vld [vmem:[#allocation7] sm:$0xff]  ;;  %v84_v1 = vld [vmem:[#allocation7 + $0x8] sm:$0xff]  ;;  %v286_v9 = vmov 0.0   ;;  %s287_s0 = smov [#allocation9]  }
  0x27   :  { %v85_v2 = vld [vmem:[#allocation7 + $0x10] sm:$0xff]  ;;  %v86_v3 = vld [vmem:[#allocation7 + $0x18] sm:$0xff]  ;;  %vm87_vm0 = vcmp.gt.f32.partialorder %v83_v0, 0.0  ;;  %vm88_vm1 = vcmp.gt.f32.partialorder %v84_v1, 0.0  ;;  %v91_v4 = vld [vmem:[#allocation2] sm:$0xff]  ;;  %s147_s2 = sshll.u32 %s287_s0, 4  ;;  %s148_s2 = int_to_ptr.vmem [resolvable:$true] %s147_s2 }
  0x28   :  { %vm89_vm2 = vcmp.gt.f32.partialorder %v85_v2, 0.0  ;;  %v92_v5 = vld [vmem:[#allocation2 + $0x8] sm:$0xff]  ;;  %vm90_vm3 = vcmp.gt.f32.partialorder %v86_v3, 0.0  ;;  %v93_v6 = vld [vmem:[#allocation2 + $0x10] sm:$0xff]  ;;  %v94_v7 = vld [vmem:[#allocation2 + $0x18] sm:$0xff]  ;;  %v161_v10 = vsel %vm87_vm0, 1.0, %v286_v9  ;;  %p238_p2 = scmp.lt.s32.totalorder %s148_s2, %s148_s2 }
  0x29   :  { %v95_v8 = vld [vmem:[#allocation5] sm:$0xff]  ;;  %v162_v11 = vsel %vm88_vm1, 1.0, %v286_v9  ;;  %v96_v12 = vld [vmem:[#allocation5 + $0x8] sm:$0xff]  ;;  %v97_v13 = vld [vmem:[#allocation5 + $0x10] sm:$0xff]  ;;  %v163_v16 = vsel %vm89_vm2, 1.0, %v286_v9  ;;  %v164_v21 = vsel %vm90_vm3, 1.0, %v286_v9 }
  0x2a   :  { %v98_v14 = vld [vmem:[#allocation5 + $0x18] sm:$0xff]  ;;  %v99_v15 = vsub.f32 %v91_v4, %v95_v8  ;;  %v126_v17 = vadd.f32 %v162_v11, %v161_v10  ;;  %v100_v18 = vsub.f32 %v92_v5, %v96_v12  ;;  %v101_v19 = vsub.f32 %v93_v6, %v97_v13  ;;  %s288_s5 = smov [#allocation8]   ;;  %s233_s7 = scalar_lea.vmem %s148_s2, 128 }
  0x2b   :  { %v102_v20 = vsub.f32 %v94_v7, %v98_v14  ;;  %s137_s6 = sshll.u32 %s288_s5, 4  ;;  %p234_p1 = scmp.ne.s32.totalorder %s148_s2, %s233_s7  ;;  %s138_s6 = int_to_ptr.vmem [resolvable:$true] %s137_s6 }
  0x2c   :  { %v103_v22 = vmul.f32 %v99_v15, %v99_v15  ;;  %v127_v23 = vadd.f32 %v163_v16, %v126_v17  ;;  %v104_v24 = vmul.f32 %v100_v18, %v100_v18  ;;  %v105_v25 = vmul.f32 %v101_v19, %v101_v19  ;;  %p239_p3 = scmp.lt.s32.totalorder %s233_s7, %s233_s7 }
  0x2d   :  { %v106_v26 = vmul.f32 %v102_v20, %v102_v20 }
  0x2e   :  { %v107_v27 = vsel %vm87_vm0, %v103_v22, 0.0  ;;  %v128_v28 = vadd.f32 %v164_v21, %v127_v23  ;;  %v108_v29 = vsel %vm88_vm1, %v104_v24, 0.0  ;;  %v109_v30 = vsel %vm89_vm2, %v105_v25, 0.0  ;;  %p240_p4 = por %p239_p3, %p238_p2 }
  0x2f   :  { %v120_v31 = vadd.f32 %v108_v29, %v107_v27  ;;  %v110_v32 = vsel %vm90_vm3, %v106_v26, 0.0 }
  0x30   :  { %130 = vst [vmem:[#allocation9] sm:$0xff] %v128_v28  ;;  %p241_p5 = pnand %p240_p4, %p234_p1 }
  0x31   :  { %v121_v33 = vadd.f32 %v120_v31, %v109_v30 }
  0x32   :  { %244 = shalt.err (!%p241_p5)
}
  0x33   :  { %150 = dma.vmem_to_hbm [thread:$0]  %s148_s2, 128, %s341_s4, [#allocation10]   ;;  %v122_v34 = vadd.f32 %v121_v33, %v110_v32 }
  0x34   :  { %s253_s10 = scalar_lea.vmem %s138_s6, 128  ;;  %p258_p7 = scmp.lt.s32.totalorder %s138_s6, %s138_s6 }
  0x35   :  { %124 = vst [vmem:[#allocation8] sm:$0xff] %v122_v34  ;;  %p254_p6 = scmp.ne.s32.totalorder %s138_s6, %s253_s10  ;;  %p259_p8 = scmp.lt.s32.totalorder %s253_s10, %s253_s10 }
  0x37   :  { %p260_p9 = por %p259_p8, %p258_p7 }
  0x39   :  { %p261_p10 = pnand %p260_p9, %p254_p6 }
  0x3b   :  { %264 = shalt.err (!%p261_p10)
}
  0x3c   :  { %140 = dma.vmem_to_hbm [thread:$0]  %s138_s6, 128, %s340_s3, [#allocation4]  }
  0x3d   :  { %277 = dma.done.wait [#allocation4], 128  }
  0x3e   :  { %278 = vsyncadd [#allocation4], 4294967168 }
  0x3f   :  { %279 = dma.done.wait [#allocation10], 128  }
  0x40   :  { %280 = vsyncadd [#allocation10], 4294967168 }
  0x41   :  { %157 = vsyncpa [#allocation3], 1 }
  0x42   :  { %158 = vsyncpa [#allocation6], 1 }
  0x43   :  { %159 = vsyncpa [#allocation4], 1 }
  0x44   :  { %160 = vsyncpa [#allocation10], 1 }

</bundles_post_ra>
